<compile_context>
chip_gen: v5e
topology: v5e:2x2
jax: 0.10.0
libtpu: 0.0.40
codegen_flags: <defaults>
</compile_context>

<pallas_src>
import functools

import jax
import jax.numpy as jnp
from jax.experimental import pallas as pl
from jax.experimental.pallas import tpu as pltpu


def _round_up(x, m):
    return ((x + m - 1) // m) * m


# ---------------------------------------------------------------------------
# Kernel
# ---------------------------------------------------------------------------
def _twin_q_kernel(obs_ref, act_ref, w1o_ref, w1a_ref, w2_ref, w3_ref, b_ref, out_ref):
    """One batch tile of the fused twin-Q forward pass.

    obs_ref : (TB, obs_size)        f32
    act_ref : (TB, action_size)     f32
    w1o_ref : (obs_size, 2H)        compute dtype (layer1 weights, both nets, obs rows)
    w1a_ref : (action_size, 2H)     compute dtype (layer1 weights, both nets, act rows)
    w2_ref  : (2H, 2H)              compute dtype (block-diagonal fused layer2)
    w3_ref  : (2H, 2)               compute dtype (block-structured fused heads)
    b_ref   : (3, 2H)               f32   row0=b1(cat), row1=b2(cat), row2[:2]=b3
    out_ref : (TB, 2)               f32   col0=q1, col1=q2
    """
    cdt = w1o_ref.dtype  # MXU compute dtype (bf16 by default)

    obs = obs_ref[...].astype(cdt)
    act = act_ref[...].astype(cdt)

    # Layer 1: both nets fused along lanes -> [TB, 2H], f32 accumulation.
    h1 = (
        jnp.dot(obs, w1o_ref[...], preferred_element_type=jnp.float32)
        + jnp.dot(act, w1a_ref[...], preferred_element_type=jnp.float32)
        + b_ref[0:1, :]
    )
    h1 = jnp.maximum(h1, 0.0).astype(cdt)

    # Layer 2: single block-diagonal [2H, 2H] matmul (one full-width MXU pass
    # on v6e/v7x; no lane-dim concatenate copy).
    h2 = jnp.dot(h1, w2_ref[...], preferred_element_type=jnp.float32) + b_ref[1:2, :]
    h2 = jnp.maximum(h2, 0.0).astype(cdt)

    # Fused heads: [TB, 2H] @ [2H, 2] -> [TB, 2]  (one matmul, one store).
    out = jnp.dot(h2, w3_ref[...], preferred_element_type=jnp.float32) + b_ref[2:3, 0:2]
    out_ref[...] = out.astype(out_ref.dtype)


# ---------------------------------------------------------------------------
# Parameter packing (do once, NOT per step)
# ---------------------------------------------------------------------------
def pack_qnetwork_params(params, obs_size, compute_dtype=jnp.bfloat16):
    """Fuse / stack / cast the per-net PyTorch-style params."""
    p1, p2 = params["q1"], params["q2"]
    H = p1["w2"].shape[0]

    w1_cat = jnp.concatenate([p1["w1"], p2["w1"]], axis=1)  # [D, 2H]

    # Block-diagonal fused layer 2: [2H, 2H] with net1 top-left, net2 bottom-right.
    w2_bd = jnp.zeros((2 * H, 2 * H), jnp.float32)
    w2_bd = w2_bd.at[:H, :H].set(p1["w2"])
    w2_bd = w2_bd.at[H:, H:].set(p2["w2"])

    # Block-structured fused heads: [2H, 2] (col 0 <- net1, col 1 <- net2).
    w3_fused = jnp.zeros((2 * H, 2), jnp.float32)
    w3_fused = w3_fused.at[:H, 0:1].set(p1["w3"])
    w3_fused = w3_fused.at[H:, 1:2].set(p2["w3"])

    biases = jnp.zeros((3, 2 * H), jnp.float32)
    biases = biases.at[0:1, :].set(jnp.concatenate([p1["b1"], p2["b1"]], axis=1))
    biases = biases.at[1:2, :].set(jnp.concatenate([p1["b2"], p2["b2"]], axis=1))
    biases = biases.at[2:3, 0:2].set(jnp.concatenate([p1["b3"], p2["b3"]], axis=1))

    return {
        "w1_obs": w1_cat[:obs_size].astype(compute_dtype),   # [obs_size, 2H]
        "w1_act": w1_cat[obs_size:].astype(compute_dtype),   # [action_size, 2H]
        "w2": w2_bd.astype(compute_dtype),                    # [2H, 2H]
        "w3": w3_fused.astype(compute_dtype),                 # [2H, 2]
        "b": biases,                                          # [3, 2H] f32
    }


# ---------------------------------------------------------------------------
# Wrapper
# ---------------------------------------------------------------------------
@functools.partial(jax.jit, static_argnames=("block_batch",))
def qnetwork_forward(obs, action, packed, *, block_batch=None):
    """obs: [B, obs_size], action: [B, action_size] -> (q1 [B,1], q2 [B,1])."""
    B, obs_size = obs.shape
    action_size = action.shape[1]
    H2 = packed["w2"].shape[-1]  # = 2H

    # ---- batch tile selection (no wrapper-side padding; Pallas masks the
    #      partial boundary block and out[:B] discards the garbage rows). ----
    if block_batch is None:
        if B <= 1024:
            tb = _round_up(B, 8)                    # one grid step: minimal overhead
        else:
            tb = _round_up(-(-B // 2), 128)         # 2 "parallel" steps -> both v7x TCs
        tb = min(tb, 2048)                          # VMEM guardrail (fine on v5e/v6e/v7x)
    else:
        tb = _round_up(min(block_batch, B), 8)
    tb = max(tb, 8)
    grid = (pl.cdiv(B, tb),)

    in_specs = [
        pl.BlockSpec((tb, obs_size), lambda i: (i, 0)),        # obs tile
        pl.BlockSpec((tb, action_size), lambda i: (i, 0)),     # action tile
        pl.BlockSpec((obs_size, H2), lambda i: (0, 0)),        # w1 (obs rows)   - resident
        pl.BlockSpec((action_size, H2), lambda i: (0, 0)),     # w1 (act rows)   - resident
        pl.BlockSpec((H2, H2), lambda i: (0, 0)),              # w2 block-diag   - resident
        pl.BlockSpec((H2, 2), lambda i: (0, 0)),               # fused heads     - resident
        pl.BlockSpec((3, H2), lambda i: (0, 0)),               # packed biases   - resident
    ]
    out_specs = pl.BlockSpec((tb, 2), lambda i: (i, 0))

    # Advisory cost estimate so XLA can overlap this sub-us call with the
    # surrounding training-step ops.
    d_in = obs_size + action_size
    flops = int(2 * B * (d_in * H2 + H2 * H2 + H2 * 2))
    bytes_accessed = int(
        obs.size * obs.dtype.itemsize
        + action.size * action.dtype.itemsize
        + sum(v.size * v.dtype.itemsize for v in packed.values())
        + B * 2 * 4
    )

    out = pl.pallas_call(
        _twin_q_kernel,
        out_shape=jax.ShapeDtypeStruct((B, 2), jnp.float32),
        grid=grid,
        in_specs=in_specs,
        out_specs=out_specs,
        compiler_params=pltpu.CompilerParams(
            dimension_semantics=("parallel",),      # megacore-shard the batch axis
            vmem_limit_bytes=32 * 1024 * 1024,
        ),
        cost_estimate=pl.CostEstimate(
            flops=flops, transcendentals=0, bytes_accessed=bytes_accessed
        ),
    )(
        obs,
        action,
        packed["w1_obs"],
        packed["w1_act"],
        packed["w2"],
        packed["w3"],
        packed["b"],
    )

    q = out[:B]
    return q[:, 0:1], q[:, 1:2]


# ---------------------------------------------------------------------------
# Init (matches PyTorch weights_init_: xavier_uniform weights, zero biases)
# ---------------------------------------------------------------------------
def _xavier_uniform(key, in_size, out_size):
    limit = (6.0 / (in_size + out_size)) ** 0.5
    return jax.random.uniform(
        key, (in_size, out_size), dtype=jnp.float32, minval=-limit, maxval=limit
    )


def init_qnetwork_params(key, obs_size, action_size, hidden_layer_size=128):
    d = obs_size + action_size
    h = hidden_layer_size
    params = {}
    for net in ("q1", "q2"):
        key, k1, k2, k3 = jax.random.split(key, 4)
        params[net] = {
            "w1": _xavier_uniform(k1, d, h),
            "b1": jnp.zeros((1, h), jnp.float32),
            "w2": _xavier_uniform(k2, h, h),
            "b2": jnp.zeros((1, h), jnp.float32),
            "w3": _xavier_uniform(k3, h, 1),
            "b3": jnp.zeros((1, 1), jnp.float32),
        }
    return params


# ---------------------------------------------------------------------------
# Pure-JAX reference (same forward; compute_dtype emulates the kernel's MXU dtype)
# ---------------------------------------------------------------------------
def reference_forward(obs, action, params, compute_dtype=jnp.float32):
    xu = jnp.concatenate([obs, action], axis=1)

    def mlp(x, p):
        h = jnp.dot(x.astype(compute_dtype), p["w1"].astype(compute_dtype),
                    preferred_element_type=jnp.float32) + p["b1"]
        h = jnp.maximum(h, 0.0)
        h = jnp.dot(h.astype(compute_dtype), p["w2"].astype(compute_dtype),
                    preferred_element_type=jnp.float32) + p["b2"]
        h = jnp.maximum(h, 0.0)
        return jnp.dot(h.astype(compute_dtype), p["w3"].astype(compute_dtype),
                       preferred_element_type=jnp.float32) + p["b3"]

    return mlp(xu, params["q1"]), mlp(xu, params["q2"])


if __name__ == "__main__":
    key = jax.random.PRNGKey(0)

    # --- config 1: small toy shapes, single partial block (B=2 < 8) ---
    obs_size, action_size, hidden, batch = 8, 4, 32, 2
    kp, ko, ka = jax.random.split(key, 3)
    params = init_qnetwork_params(kp, obs_size, action_size, hidden_layer_size=hidden)
    packed = pack_qnetwork_params(params, obs_size)  # bf16 MXU inputs by default
    obs = jax.random.normal(ko, (batch, obs_size), dtype=jnp.float32)
    action = jax.random.normal(ka, (batch, action_size), dtype=jnp.float32)

    q1, q2 = qnetwork_forward(obs, action, packed)
    jax.block_until_ready((q1, q2))

    r1, r2 = reference_forward(obs, action, params, compute_dtype=jnp.bfloat16)
    f1, f2 = reference_forward(obs, action, params, compute_dtype=jnp.float32)
    assert q1.shape == (batch, 1) and q2.shape == (batch, 1)
    assert jnp.allclose(q1, r1, atol=2e-3, rtol=2e-3)
    assert jnp.allclose(q2, r2, atol=2e-3, rtol=2e-3)
    # loose sanity check vs. the exact-f32 PyTorch-equivalent forward
    assert jnp.allclose(q1, f1, atol=1e-1, rtol=1e-1)
    assert jnp.allclose(q2, f2, atol=1e-1, rtol=1e-1)

    # --- config 2: module-default hidden=128, B=300 ---
    obs_size2, action_size2, hidden2, batch2 = 11, 5, 128, 300
    kp2, ko2, ka2 = jax.random.split(jax.random.PRNGKey(1), 3)
    params2 = init_qnetwork_params(kp2, obs_size2, action_size2, hidden_layer_size=hidden2)
    packed2 = pack_qnetwork_params(params2, obs_size2)
    obs2 = jax.random.normal(ko2, (batch2, obs_size2), dtype=jnp.float32)
    action2 = jax.random.normal(ka2, (batch2, action_size2), dtype=jnp.float32)
    r1b, r2b = reference_forward(obs2, action2, params2, compute_dtype=jnp.bfloat16)

    # 2a: default tiling -> single grid step (tb = 304 covers all 300 rows)
    q1b, q2b = qnetwork_forward(obs2, action2, packed2)
    jax.block_until_ready((q1b, q2b))
    assert q1b.shape == (batch2, 1) and q2b.shape == (batch2, 1)
    assert jnp.allclose(q1b, r1b, atol=5e-3, rtol=5e-3)
    assert jnp.allclose(q2b, r2b, atol=5e-3, rtol=5e-3)

    # 2b: explicit small tile -> multi-step grid with a masked partial last block
    q1c, q2c = qnetwork_forward(obs2, action2, packed2, block_batch=128)
    jax.block_until_ready((q1c, q2c))
    assert jnp.allclose(q1c, r1b, atol=5e-3, rtol=5e-3)
    assert jnp.allclose(q2c, r2b, atol=5e-3, rtol=5e-3)

    print("KERNEL_OK")
</pallas_src>

<mosaic_0001>
module attributes {stable_mosaic.version = 11 : i64} {
  func.func @_twin_q_kernel(%arg0: i32, %arg1: memref<8x8xf32, #tpu.memory_space<vmem>>, %arg2: memref<8x4xf32, #tpu.memory_space<vmem>>, %arg3: memref<8x64xbf16, #tpu.memory_space<vmem>>, %arg4: memref<4x64xbf16, #tpu.memory_space<vmem>>, %arg5: memref<64x64xbf16, #tpu.memory_space<vmem>>, %arg6: memref<64x2xbf16, #tpu.memory_space<vmem>>, %arg7: memref<3x64xf32, #tpu.memory_space<vmem>>, %arg8: memref<8x2xf32, #tpu.memory_space<vmem>>) attributes {dimension_semantics = [#tpu.dimension_semantics<parallel>], iteration_bounds = array<i64: 1>, scalar_prefetch = 0 : i64, scratch_operands = 0 : i64, tpu.core_type = #tpu.core_type<tc>, window_params = [{transform_indices = @transform_0, window_bounds = array<i64: 8, 8>}, {transform_indices = @transform_1, window_bounds = array<i64: 8, 4>}, {pipeline_mode = #tpu.pipeline_mode<synchronous>, transform_indices = @transform_2, window_bounds = array<i64: 8, 64>}, {pipeline_mode = #tpu.pipeline_mode<synchronous>, transform_indices = @transform_3, window_bounds = array<i64: 4, 64>}, {pipeline_mode = #tpu.pipeline_mode<synchronous>, transform_indices = @transform_4, window_bounds = array<i64: 64, 64>}, {pipeline_mode = #tpu.pipeline_mode<synchronous>, transform_indices = @transform_5, window_bounds = array<i64: 64, 2>}, {pipeline_mode = #tpu.pipeline_mode<synchronous>, transform_indices = @transform_6, window_bounds = array<i64: 3, 64>}, {transform_indices = @transform_7, window_bounds = array<i64: 8, 2>}]} {
    %c0 = arith.constant 0 : index
    %c0_0 = arith.constant 0 : index
    %0 = vector.load %arg1[%c0, %c0_0] : memref<8x8xf32, #tpu.memory_space<vmem>>, vector<8x8xf32>
    %1 = arith.truncf %0 : vector<8x8xf32> to vector<8x8xbf16>
    %c0_1 = arith.constant 0 : index
    %c0_2 = arith.constant 0 : index
    %2 = vector.load %arg2[%c0_1, %c0_2] : memref<8x4xf32, #tpu.memory_space<vmem>>, vector<8x4xf32>
    %3 = arith.truncf %2 : vector<8x4xf32> to vector<8x4xbf16>
    %c0_3 = arith.constant 0 : index
    %c0_4 = arith.constant 0 : index
    %4 = vector.load %arg3[%c0_3, %c0_4] : memref<8x64xbf16, #tpu.memory_space<vmem>>, vector<8x64xbf16>
    %cst = arith.constant dense<0.000000e+00> : vector<8x64xf32>
    %5 = tpu.matmul %1, %4, %cst {dimension_numbers = #tpu.dot_dimension_numbers<[1], [0], [0], [1], [0, 0, 1, 1], [], []>} : vector<8x8xbf16>, vector<8x64xbf16>, vector<8x64xf32> -> vector<8x64xf32>
    %c0_5 = arith.constant 0 : index
    %c0_6 = arith.constant 0 : index
    %6 = vector.load %arg4[%c0_5, %c0_6] : memref<4x64xbf16, #tpu.memory_space<vmem>>, vector<4x64xbf16>
    %cst_7 = arith.constant dense<0.000000e+00> : vector<8x64xf32>
    %7 = tpu.matmul %3, %6, %cst_7 {dimension_numbers = #tpu.dot_dimension_numbers<[1], [0], [0], [1], [0, 0, 1, 1], [], []>} : vector<8x4xbf16>, vector<4x64xbf16>, vector<8x64xf32> -> vector<8x64xf32>
    %8 = arith.addf %5, %7 : vector<8x64xf32>
    %c0_8 = arith.constant 0 : index
    %c0_9 = arith.constant 0 : index
    %9 = vector.load %arg7[%c0_8, %c0_9] : memref<3x64xf32, #tpu.memory_space<vmem>>, vector<1x64xf32>
    %10 = vector.broadcast %9 : vector<1x64xf32> to vector<8x64xf32>
    %11 = arith.addf %8, %10 : vector<8x64xf32>
    %cst_10 = arith.constant 0.000000e+00 : f32
    %12 = vector.broadcast %cst_10 : f32 to vector<8x64xf32>
    %13 = arith.maximumf %11, %12 : vector<8x64xf32>
    %14 = arith.truncf %13 : vector<8x64xf32> to vector<8x64xbf16>
    %c0_11 = arith.constant 0 : index
    %c0_12 = arith.constant 0 : index
    %15 = vector.load %arg5[%c0_11, %c0_12] : memref<64x64xbf16, #tpu.memory_space<vmem>>, vector<64x64xbf16>
    %cst_13 = arith.constant dense<0.000000e+00> : vector<8x64xf32>
    %16 = tpu.matmul %14, %15, %cst_13 {dimension_numbers = #tpu.dot_dimension_numbers<[1], [0], [0], [1], [0, 0, 1, 1], [], []>} : vector<8x64xbf16>, vector<64x64xbf16>, vector<8x64xf32> -> vector<8x64xf32>
    %c1 = arith.constant 1 : index
    %c0_14 = arith.constant 0 : index
    %17 = vector.load %arg7[%c1, %c0_14] : memref<3x64xf32, #tpu.memory_space<vmem>>, vector<1x64xf32>
    %18 = vector.broadcast %17 : vector<1x64xf32> to vector<8x64xf32>
    %19 = arith.addf %16, %18 : vector<8x64xf32>
    %cst_15 = arith.constant 0.000000e+00 : f32
    %20 = vector.broadcast %cst_15 : f32 to vector<8x64xf32>
    %21 = arith.maximumf %19, %20 : vector<8x64xf32>
    %22 = arith.truncf %21 : vector<8x64xf32> to vector<8x64xbf16>
    %c0_16 = arith.constant 0 : index
    %c0_17 = arith.constant 0 : index
    %23 = vector.load %arg6[%c0_16, %c0_17] : memref<64x2xbf16, #tpu.memory_space<vmem>>, vector<64x2xbf16>
    %cst_18 = arith.constant dense<0.000000e+00> : vector<8x2xf32>
    %24 = tpu.matmul %22, %23, %cst_18 {dimension_numbers = #tpu.dot_dimension_numbers<[1], [0], [0], [1], [0, 0, 1, 1], [], []>} : vector<8x64xbf16>, vector<64x2xbf16>, vector<8x2xf32> -> vector<8x2xf32>
    %c2 = arith.constant 2 : index
    %c0_19 = arith.constant 0 : index
    %25 = vector.load %arg7[%c2, %c0_19] : memref<3x64xf32, #tpu.memory_space<vmem>>, vector<1x2xf32>
    %26 = vector.broadcast %25 : vector<1x2xf32> to vector<8x2xf32>
    %27 = arith.addf %24, %26 : vector<8x2xf32>
    %c0_20 = arith.constant 0 : index
    %c0_21 = arith.constant 0 : index
    %28 = vector.load %arg8[%c0_20, %c0_21] : memref<8x2xf32, #tpu.memory_space<vmem>>, vector<8x2xf32>
    tpu.vector_store %arg8[%c0_20, %c0_21], %27 {strides = array<i32>} : memref<8x2xf32, #tpu.memory_space<vmem>>, vector<8x2xf32>,
    return
  }
  func.func @transform_0(%arg0: i32) -> (i32, i32) {
    %c0_i32 = arith.constant 0 : i32
    %c0_i32_0 = arith.constant 0 : i32
    return %arg0, %c0_i32 : i32, i32
  }
  func.func @transform_1(%arg0: i32) -> (i32, i32) {
    %c0_i32 = arith.constant 0 : i32
    %c0_i32_0 = arith.constant 0 : i32
    return %arg0, %c0_i32 : i32, i32
  }
  func.func @transform_2(%arg0: i32) -> (i32, i32) {
    %c0_i32 = arith.constant 0 : i32
    %c0_i32_0 = arith.constant 0 : i32
    %c0_i32_1 = arith.constant 0 : i32
    return %c0_i32, %c0_i32_0 : i32, i32
  }
  func.func @transform_3(%arg0: i32) -> (i32, i32) {
    %c0_i32 = arith.constant 0 : i32
    %c0_i32_0 = arith.constant 0 : i32
    %c0_i32_1 = arith.constant 0 : i32
    return %c0_i32, %c0_i32_0 : i32, i32
  }
  func.func @transform_4(%arg0: i32) -> (i32, i32) {
    %c0_i32 = arith.constant 0 : i32
    %c0_i32_0 = arith.constant 0 : i32
    %c0_i32_1 = arith.constant 0 : i32
    return %c0_i32, %c0_i32_0 : i32, i32
  }
  func.func @transform_5(%arg0: i32) -> (i32, i32) {
    %c0_i32 = arith.constant 0 : i32
    %c0_i32_0 = arith.constant 0 : i32
    %c0_i32_1 = arith.constant 0 : i32
    return %c0_i32, %c0_i32_0 : i32, i32
  }
  func.func @transform_6(%arg0: i32) -> (i32, i32) {
    %c0_i32 = arith.constant 0 : i32
    %c0_i32_0 = arith.constant 0 : i32
    %c0_i32_1 = arith.constant 0 : i32
    return %c0_i32, %c0_i32_0 : i32, i32
  }
  func.func @transform_7(%arg0: i32) -> (i32, i32) {
    %c0_i32 = arith.constant 0 : i32
    %c0_i32_0 = arith.constant 0 : i32
    return %arg0, %c0_i32 : i32, i32
  }
}

</mosaic_0001>

<bundles_post_ra>
// kernel: qnetwork_forward.1
= control target key start
LH: loop header
LB: loop body
LE: loop exit
PB: predicated region body
PF: predicated region fallthrough
CT: control target
= control target key end

     0   :  { %12 = vsyncpa [#allocation3], 0  ;;  %s531_s0 = inlined_call_operand.hbm [shape: f32[2,8], index: 0, kind: input, shape index: {}]   ;;  %s532_s1 = inlined_call_operand.hbm [shape: f32[2,4], index: 1, kind: input, shape index: {}]   ;;  %s533_s2 = inlined_call_operand.vmem [shape: bf16[8,64], index: 2, kind: input, shape index: {}]   ;;  %s534_s3 = inlined_call_operand.hbm [shape: bf16[4,64], index: 3, kind: input, shape index: {}]   ;;  %s535_s4 = inlined_call_operand.vmem [shape: bf16[64,64], index: 4, kind: input, shape index: {}]   ;;  %s536_s5 = inlined_call_operand.vmem [shape: bf16[64,2], index: 5, kind: input, shape index: {}]   ;;  %s537_s6 = inlined_call_operand.hbm [shape: f32[3,64], index: 6, kind: input, shape index: {}]   ;;  %s538_s7 = inlined_call_operand.vmem [shape: f32[2,2], index: 7, kind: output, shape index: {}]  }
   0x1   :  { %13 = vsyncpa [#allocation5], 0 }
   0x2   :  { %14 = vsyncpa [#allocation8], 0 }
   0x3   :  { %18 = vsyncadd [#allocation3], 96  ;;  %s19_s26 = sshll.u32 %s531_s0, 4  ;;  %s443_s27 = smov [#allocation2]   ;;  %s20_s26 = int_to_ptr.hbm [resolvable:$true] %s19_s26 }
   0x4   :  { %s21_s28 = sshll.u32 %s443_s27, 4  ;;  %s444_s29 = smov 32   ;;  %s22_s28 = int_to_ptr.vmem [resolvable:$true] %s21_s28 }
   0x5   :  { %s445_s30 = smov 2  }
   0x6   :  { %27 = dma.hbm_to_vmem [thread:$0]  %s20_s26, 32, %s22_s28, [#allocation3], %s444_s29, %s444_s29, %s445_s30  }
   0x7   :  { %31 = vsyncadd [#allocation5], 96  ;;  %s32_s10 = sshll.u32 %s532_s1, 4  ;;  %s446_s11 = smov [#allocation4]   ;;  %s33_s10 = int_to_ptr.hbm [resolvable:$true] %s32_s10 }
   0x8   :  { %s34_s12 = sshll.u32 %s446_s11, 4  ;;  %s48_s0 = sshll.u32 %s534_s3, 4  ;;  %s35_s12 = int_to_ptr.vmem [resolvable:$true] %s34_s12  ;;  %s49_s0 = int_to_ptr.hbm [resolvable:$true] %s48_s0 }
   0x9   :  { %40 = dma.hbm_to_vmem [thread:$0]  %s33_s10, 32, %s35_s12, [#allocation5], %s444_s29, %s444_s29, %s445_s30  }
   0xa   :  { %s447_s15 = smov [#allocation6]   ;;  %s63_s19 = sshll.u32 %s537_s6, 4  ;;  %s64_s19 = int_to_ptr.hbm [resolvable:$true] %s63_s19 }
   0xb   :  { %s50_s16 = sshll.u32 %s447_s15, 4  ;;  %s448_s1 = smov [#allocation7]   ;;  %s51_s16 = int_to_ptr.vmem [resolvable:$true] %s50_s16 }
   0xc   :  { %53 = dma.hbm_to_vmem [thread:$0]  %s49_s0, 32, %s51_s16, [#allocation5]  }
   0xd   :  { %s65_s20 = sshll.u32 %s448_s1, 4  ;;  %s66_s20 = int_to_ptr.vmem [resolvable:$true] %s65_s20 }
   0xe   :  { %68 = dma.hbm_to_vmem [thread:$0]  %s64_s19, 64, %s66_s20, [#allocation8]  }
   0xf   :  { %437 = dma.done.wait [#allocation3], 128  }
  0x10   :  { %438 = vsyncadd [#allocation3], 4294967168 }
  0x11   :  { %439 = dma.done.wait [#allocation5], 160  }
  0x12   :  { %440 = vsyncadd [#allocation5], 4294967136 }
  0x13   :  { %441 = dma.done.wait [#allocation8], 64  }
  0x14   :  { %442 = vsyncadd [#allocation8], 4294967232  ;;  %vm96_vm0 = vcmask 1041408   ;;  %vm117_vm1 = vcmask 1043456   ;;  %v91_v0 = vld [vmem:[#allocation6] sm:$0x3] }
  0x15   :  { %v90_v1 = vld [vmem:[%s533_s2] sm:$0xf]  ;;  %v88_v2 = vld [vmem:[#allocation4] sm:$0xff]  ;;  %vm92_vm2 = vcmask 31744   ;;  %v98_v3 = vsel %vm96_vm0, %v91_v0, 0  ;;  %vm113_vm3 = vcmask 64512  }
  0x16   :  { %v119_v4 = vsel %vm117_vm1, %v90_v1, 0  ;;  %v89_v5 = vpack.c.bf16 %v88_v2, %v88_v2  ;;  %v86_v6 = vld [vmem:[#allocation2] sm:$0xff]  ;;  %v327_v7 = vld [vmem:[%s535_s4 + $0x18] sm:$0xff]  ;;  %107 = vmatpush.bf16.msra.mxu0 %v98_v3  ;;  %v326_v9 = vld [vmem:[%s535_s4 + $0x10] sm:$0xff]  ;;  %vm173_vm4 = vcmask 523264   ;;  %vm242_vm5 = vcmask 15360  }
  0x17   :  { %128 = vmatpush.bf16.msra.mxu1 %v119_v4  ;;  %v87_v8 = vpack.c.bf16 %v86_v6, %v86_v6  ;;  %181 = vmatpush.bf16.msra.mxu2 %v327_v7  ;;  %v325_v10 = vld [vmem:[%s535_s4 + $0x8] sm:$0xff]  ;;  %v324_v11 = vld [vmem:[%s535_s4] sm:$0xff]  ;;  %v331_v12 = vld [vmem:[%s536_s5 + $0x18] sm:$0xff] }
  0x18   :  { %233 = vmatpush.bf16.msra.mxu3 %v331_v12  ;;  %v330_v13 = vld [vmem:[%s536_s5 + $0x10] sm:$0xff]  ;;  %v329_v23 = vld [vmem:[%s536_s5 + $0x8] sm:$0xff]  ;;  %v328_v24 = vld [vmem:[%s536_s5] sm:$0xff] }
  0x19   :  { %288 = vmatmul.msk.bf16.vlgmr.msra.gmra.mxu0 %vm92_vm2, %v89_v5  ;;  %v338_v14 = vld [vmem:[#allocation7] ss:$0 sm:$0xff]  ;;  %v339_v25 = vld [vmem:[#allocation7 + $0x1] ss:$0 sm:$0xff]  ;;  %v340_v31 = vld [vmem:[#allocation7 + $0x2] ss:$0 sm:$0xff] }
  0x1a   :  { %289 = vmatmul.msk.bf16.vlgmr.msra.gmra.mxu1 %vm113_vm3, %v87_v8 }
  0x1b   :  { %182 = vmatpush.bf16.msra.mxu2 %v326_v9 }
  0x1c   :  { %234 = vmatpush.bf16.msra.mxu3 %v330_v13 }
  0x1f   :  { %183 = vmatpush.bf16.msra.mxu2 %v325_v10 }
  0x20   :  { %235 = vmatpush.bf16.msra.mxu3 %v329_v23 }
  0x23   :  { %184 = vmatpush.bf16.msra.mxu2 %v324_v11 }
  0x24   :  { %236 = vmatpush.bf16.msra.mxu3 %v328_v24 }
  0x96   :  { %v109_v15 = vpop.f32.mrf.mxu0 }
  0x97   :  { %v130_v16 = vpop.f32.mrf.mxu1 }
  0x98   :  { %v131_v17 = vadd.f32 %v130_v16, %v109_v15 }
  0x9a   :  { %v136_v18 = vadd.f32 %v338_v14, %v131_v17 }
  0x9c   :  { %v137_v19 = vmax.f32 %v136_v18, 0.0 }
  0x9e   :  { %v138_v20 = vpack.c.bf16 %v137_v19, %v137_v19  ;;  %v111_v21 = vpop.f32.mrf.mxu0 }
  0x9f   :  { %v132_v22 = vpop.f32.mrf.mxu1 }
  0xa0   :  { %306 = vmatmul.msk.bf16.vlgmr.msra.gmra.mxu2 %vm173_vm4, %v138_v20 }
 0x123   :  { %v186_v26 = vpop.f32.mrf.mxu2 }
 0x124   :  { %v187_v27 = vadd.f32 %v339_v25, %v186_v26 }
 0x126   :  { %v190_v28 = vmax.f32 %v187_v27, 0.0 }
 0x128   :  { %v191_v29 = vpack.c.bf16 %v190_v28, %v190_v28 }
 0x12a   :  { %323 = vmatmul.msk.bf16.vlgmr.msra.gmra.mxu3 %vm173_vm4, %v191_v29 }
 0x12b   :  { %v188_v30 = vpop.f32.mrf.mxu2 }
 0x1ad   :  { %v238_v32 = vpop.f32.mrf.mxu3 }
 0x1ae   :  { %v239_v33 = vadd.f32 %v340_v31, %v238_v32 }
 0x1b0   :  { %243 = vst.msk [vmem:[#allocation9] sm:$0xff] %vm242_vm5, %v239_v33 }
 0x1b5   :  { %v240_v34 = vpop.f32.mrf.mxu3 }
 0x1b7   :  { %v262_v35 = vld [vmem:[#allocation9] sm:$0x3] }
 0x1b8   :  { %263 = vst [vmem:[%s538_s7] sm:$0x3] %v262_v35 }
 0x1b9   :  { %281 = vsyncpa [#allocation3], 1 }
 0x1ba   :  { %282 = vsyncpa [#allocation5], 1 }
 0x1bb   :  { %283 = vsyncpa [#allocation8], 1 }

</bundles_post_ra>
